<compile_context>
chip_gen: v5e
topology: v5e:2x2
jax: 0.10.0
libtpu: 0.0.40
codegen_flags: <defaults>
</compile_context>

<pallas_src>
import jax
import jax.numpy as jnp
from jax.experimental import pallas as pl
from jax.experimental.pallas import tpu as pltpu

BN_EPS = 1e-5


def _round_up(n, m):
    return (n + m - 1) // m * m


# --------------------------------------------------------------------------- kernel
def classblock_kernel(x_ref, w1t_ref, w2t_ref, b2_ref, out_ref, h_ref):
    # Bottleneck matmul only on the first class-tile step for this batch tile; the bf16
    # activations are cached in VMEM scratch and reused across all class tiles.
    # BN (eval) is folded into W1T; its bias is folded into b2' (see prepare_params), so
    # there is no epilogue add here and no standalone f32->bf16 cast pass.
    @pl.when(pl.program_id(1) == 0)
    def _():
        h_ref[...] = jnp.dot(
            x_ref[...], w1t_ref[...], preferred_element_type=jnp.float32
        ).astype(h_ref.dtype)

    # Classifier matmul: bf16 operands, f32 accumulation, bias epilogue in f32.
    logits = jnp.dot(h_ref[...], w2t_ref[...], preferred_element_type=jnp.float32)
    out_ref[...] = (logits + b2_ref[...]).astype(out_ref.dtype)


# --------------------------------------------------------------------------- wrapper
def prepare_params(raw, compute_dtype=jnp.bfloat16):
    """One-time prep: fold eval BN into Linear1, fold its bias through Linear2,
    transpose, pad C to a multiple of 256, cast weights to bf16."""
    scale = raw["gamma"] * jax.lax.rsqrt(raw["running_var"] + BN_EPS)     # (1, D_bn)
    w1t = raw["w1"].T * scale                                             # (D_in, D_bn)
    b1_fold = (raw["b1"] - raw["running_mean"]) * scale + raw["beta"]     # (1, D_bn)
    w2t = raw["w2"].T                                                     # (D_bn, C)
    # The block is affine between the two matmuls (relu=False, eval-mode dropout),
    # so:  out = (x @ W1T) @ W2T + (b1_fold @ W2T + b2).  Fold computed in f32.
    b2 = b1_fold @ w2t + raw["b2"]                                        # (1, C)

    C = w2t.shape[1]
    C_pad = _round_up(C, 256)          # 2x256x256 MXU on v6e/v7x; lane-dense stores
    if C_pad != C:
        w2t = jnp.pad(w2t, ((0, 0), (0, C_pad - C)))
        b2 = jnp.pad(b2, ((0, 0), (0, C_pad - C)))

    return dict(
        w1t=jnp.asarray(w1t, compute_dtype),
        w2t=jnp.asarray(w2t, compute_dtype),
        b2=jnp.asarray(b2, jnp.float32),
        class_num=C,
    )


def class_block(x, kparams, *, block_b=512, block_c=2048,
                out_dtype=jnp.bfloat16, vmem_limit_bytes=32 << 20):
    """Fused ClassBlock forward. x: (B, input_dim)."""
    w1t, w2t, b2 = kparams["w1t"], kparams["w2t"], kparams["b2"]
    C = kparams["class_num"]

    B, D_in = x.shape
    D_bn, C_pad = w2t.shape

    # --- batch tiling: minimal zero-row padding, and >=2 grid steps when possible
    #     (so a v7x chip's second TensorCore gets work; no-op on single-TC v5e/v6e).
    sub = 16 if B >= 16 else 8                       # bf16 sublane packing
    nb = pl.cdiv(B, block_b)
    if nb < 2 and B >= 2 * sub:
        nb = 2
    tb = _round_up(pl.cdiv(B, nb), sub)
    B_pad = nb * tb

    # --- class tiling: keep W2T fully VMEM-resident when small, tile it otherwise.
    if C_pad <= block_c:
        tc, nc = C_pad, 1
    else:
        tc = block_c
        c_grid = _round_up(C_pad, tc)
        if c_grid != C_pad:
            w2t = jnp.pad(w2t, ((0, 0), (0, c_grid - C_pad)))
            b2 = jnp.pad(b2, ((0, 0), (0, c_grid - C_pad)))
            C_pad = c_grid
        nc = C_pad // tc

    xc = x.astype(w1t.dtype)
    if B_pad != B:
        xc = jnp.pad(xc, ((0, B_pad - B), (0, 0)))

    # Blocks whose index never changes across the grid only need a single VMEM buffer.
    resident = dict(pipeline_mode=pl.Buffered(1))
    w2_buf = resident if nc == 1 else {}

    out = pl.pallas_call(
        classblock_kernel,
        out_shape=jax.ShapeDtypeStruct((B_pad, C_pad), out_dtype),
        grid=(nb, nc),
        in_specs=[
            pl.BlockSpec((tb, D_in), lambda i, j: (i, 0)),                # x tile (pipelined)
            pl.BlockSpec((D_in, D_bn), lambda i, j: (0, 0), **resident),  # W1T (BN folded)
            pl.BlockSpec((D_bn, tc), lambda i, j: (0, j), **w2_buf),      # W2T tile
            pl.BlockSpec((1, tc), lambda i, j: (0, j), **w2_buf),         # folded b2 tile
        ],
        out_specs=pl.BlockSpec((tb, tc), lambda i, j: (i, j)),
        scratch_shapes=[pltpu.VMEM((tb, D_bn), jnp.bfloat16)],            # cached bottleneck
        compiler_params=pltpu.CompilerParams(
            dimension_semantics=("parallel", "arbitrary"),
            vmem_limit_bytes=vmem_limit_bytes,   # safe on v7x (64 MiB/TC); raise on v5e/v6e
        ),
    )(xc, w1t, w2t, b2)

    return out[:B, :C]


# --------------------------------------------------------------------------- init / ref
def init_params(key, input_dim, num_bottleneck, class_num):
    """Deterministic init matching the PyTorch module's init scheme (raw params)."""
    k1, k2 = jax.random.split(key, 2)
    # Linear1: kaiming_normal_(a=0, mode='fan_out') -> std = sqrt(2 / out_features)
    std1 = (2.0 / num_bottleneck) ** 0.5
    w1 = std1 * jax.random.normal(k1, (num_bottleneck, input_dim), jnp.float32)
    b1 = jnp.zeros((1, num_bottleneck), jnp.float32)
    # BatchNorm1d: weight=1, bias=0; fresh running stats mean=0, var=1
    gamma = jnp.ones((1, num_bottleneck), jnp.float32)
    beta = jnp.zeros((1, num_bottleneck), jnp.float32)
    running_mean = jnp.zeros((1, num_bottleneck), jnp.float32)
    running_var = jnp.ones((1, num_bottleneck), jnp.float32)
    # Classifier Linear: normal std=0.001, bias=0
    w2 = 0.001 * jax.random.normal(k2, (class_num, num_bottleneck), jnp.float32)
    b2 = jnp.zeros((1, class_num), jnp.float32)
    return dict(w1=w1, b1=b1, gamma=gamma, beta=beta,
                running_mean=running_mean, running_var=running_var,
                w2=w2, b2=b2)


def reference_forward(x, p):
    """Plain-JAX f32 reference of the eval-mode module."""
    h = x @ p["w1"].T + p["b1"]
    h = (h - p["running_mean"]) / jnp.sqrt(p["running_var"] + BN_EPS)
    h = h * p["gamma"] + p["beta"]
    return h @ p["w2"].T + p["b2"]


# --------------------------------------------------------------------------- main
if __name__ == "__main__":
    # Small shapes consistent with ClassBlock's (N, input_dim) forward input.
    B, input_dim, num_bottleneck, class_num = 8, 256, 128, 16

    key = jax.random.PRNGKey(0)
    kx, kp = jax.random.split(key)
    x = jax.random.normal(kx, (B, input_dim), jnp.float32)

    raw_params = init_params(kp, input_dim, num_bottleneck, class_num)
    kparams = prepare_params(raw_params)          # one-time fold/transpose/pad/cast

    out = class_block(x, kparams)
    out = jax.block_until_ready(out)

    ref = reference_forward(x, raw_params)
    assert out.shape == (B, class_num)
    # bf16 operands/output with f32 accumulation vs pure-f32 reference -> loose tolerances.
    out_f32 = out.astype(jnp.float32)
    assert jnp.allclose(out_f32, ref, atol=5e-3, rtol=5e-2), (
        f"mismatch vs reference, max abs err = {float(jnp.max(jnp.abs(out_f32 - ref)))}"
    )

    print("KERNEL_OK")
</pallas_src>

<mosaic_0001>
module attributes {stable_mosaic.version = 11 : i64} {
  func.func @classblock_kernel(%arg0: i32, %arg1: i32, %arg2: memref<8x256xbf16, #tpu.memory_space<vmem>>, %arg3: memref<256x128xbf16, #tpu.memory_space<vmem>>, %arg4: memref<128x256xbf16, #tpu.memory_space<vmem>>, %arg5: memref<1x256xf32, #tpu.memory_space<vmem>>, %arg6: memref<8x256xbf16, #tpu.memory_space<vmem>>, %arg7: memref<8x128xbf16, #tpu.memory_space<vmem>>) attributes {dimension_semantics = [#tpu.dimension_semantics<parallel>, #tpu.dimension_semantics<arbitrary>], iteration_bounds = array<i64: 1, 1>, scalar_prefetch = 0 : i64, scratch_operands = 1 : i64, tpu.core_type = #tpu.core_type<tc>, window_params = [{transform_indices = @transform_0, window_bounds = array<i64: 8, 256>}, {pipeline_mode = #tpu.pipeline_mode<synchronous>, transform_indices = @transform_1, window_bounds = array<i64: 256, 128>}, {pipeline_mode = #tpu.pipeline_mode<synchronous>, transform_indices = @transform_2, window_bounds = array<i64: 128, 256>}, {pipeline_mode = #tpu.pipeline_mode<synchronous>, transform_indices = @transform_3, window_bounds = array<i64: 1, 256>}, {transform_indices = @transform_4, window_bounds = array<i64: 8, 256>}]} {
    %c0_i32 = arith.constant 0 : i32
    %0 = arith.cmpi eq, %arg1, %c0_i32 : i32
    %1 = arith.extui %0 : i1 to i32
    %c0_i32_0 = arith.constant 0 : i32
    %2 = arith.cmpi ne, %1, %c0_i32_0 : i32
    scf.if %2 {
      %c0_8 = arith.constant 0 : index
      %c0_9 = arith.constant 0 : index
      %11 = vector.load %arg2[%c0_8, %c0_9] : memref<8x256xbf16, #tpu.memory_space<vmem>>, vector<8x256xbf16>
      %c0_10 = arith.constant 0 : index
      %c0_11 = arith.constant 0 : index
      %12 = vector.load %arg3[%c0_10, %c0_11] : memref<256x128xbf16, #tpu.memory_space<vmem>>, vector<256x128xbf16>
      %cst_12 = arith.constant dense<0.000000e+00> : vector<8x128xf32>
      %13 = tpu.matmul %11, %12, %cst_12 {dimension_numbers = #tpu.dot_dimension_numbers<[1], [0], [0], [1], [0, 0, 1, 1], [], []>} : vector<8x256xbf16>, vector<256x128xbf16>, vector<8x128xf32> -> vector<8x128xf32>
      %14 = arith.truncf %13 : vector<8x128xf32> to vector<8x128xbf16>
      %c0_13 = arith.constant 0 : index
      %c0_14 = arith.constant 0 : index
      %15 = vector.load %arg7[%c0_13, %c0_14] : memref<8x128xbf16, #tpu.memory_space<vmem>>, vector<8x128xbf16>
      tpu.vector_store %arg7[%c0_13, %c0_14], %14 {strides = array<i32>} : memref<8x128xbf16, #tpu.memory_space<vmem>>, vector<8x128xbf16>,
    } else {
    }
    %c0 = arith.constant 0 : index
    %c0_1 = arith.constant 0 : index
    %3 = vector.load %arg7[%c0, %c0_1] : memref<8x128xbf16, #tpu.memory_space<vmem>>, vector<8x128xbf16>
    %c0_2 = arith.constant 0 : index
    %c0_3 = arith.constant 0 : index
    %4 = vector.load %arg4[%c0_2, %c0_3] : memref<128x256xbf16, #tpu.memory_space<vmem>>, vector<128x256xbf16>
    %cst = arith.constant dense<0.000000e+00> : vector<8x256xf32>
    %5 = tpu.matmul %3, %4, %cst {dimension_numbers = #tpu.dot_dimension_numbers<[1], [0], [0], [1], [0, 0, 1, 1], [], []>} : vector<8x128xbf16>, vector<128x256xbf16>, vector<8x256xf32> -> vector<8x256xf32>
    %c0_4 = arith.constant 0 : index
    %c0_5 = arith.constant 0 : index
    %6 = vector.load %arg5[%c0_4, %c0_5] : memref<1x256xf32, #tpu.memory_space<vmem>>, vector<1x256xf32>
    %7 = vector.broadcast %6 : vector<1x256xf32> to vector<8x256xf32>
    %8 = arith.addf %5, %7 : vector<8x256xf32>
    %9 = arith.truncf %8 : vector<8x256xf32> to vector<8x256xbf16>
    %c0_6 = arith.constant 0 : index
    %c0_7 = arith.constant 0 : index
    %10 = vector.load %arg6[%c0_6, %c0_7] : memref<8x256xbf16, #tpu.memory_space<vmem>>, vector<8x256xbf16>
    tpu.vector_store %arg6[%c0_6, %c0_7], %9 {strides = array<i32>} : memref<8x256xbf16, #tpu.memory_space<vmem>>, vector<8x256xbf16>,
    return
  }
  func.func @transform_0(%arg0: i32, %arg1: i32) -> (i32, i32) {
    %c0_i32 = arith.constant 0 : i32
    %c0_i32_0 = arith.constant 0 : i32
    return %arg0, %c0_i32 : i32, i32
  }
  func.func @transform_1(%arg0: i32, %arg1: i32) -> (i32, i32) {
    %c0_i32 = arith.constant 0 : i32
    %c0_i32_0 = arith.constant 0 : i32
    %c0_i32_1 = arith.constant 0 : i32
    return %c0_i32, %c0_i32_0 : i32, i32
  }
  func.func @transform_2(%arg0: i32, %arg1: i32) -> (i32, i32) {
    %c0_i32 = arith.constant 0 : i32
    %c0_i32_0 = arith.constant 0 : i32
    return %c0_i32, %arg1 : i32, i32
  }
  func.func @transform_3(%arg0: i32, %arg1: i32) -> (i32, i32) {
    %c0_i32 = arith.constant 0 : i32
    %c0_i32_0 = arith.constant 0 : i32
    return %c0_i32, %arg1 : i32, i32
  }
  func.func @transform_4(%arg0: i32, %arg1: i32) -> (i32, i32) {
    %c0_i32 = arith.constant 0 : i32
    return %arg0, %arg1 : i32, i32
  }
}

</mosaic_0001>

<bundles_post_ra>
// kernel: tpu_custom_call.1
= control target key start
LH: loop header
LB: loop body
LE: loop exit
PB: predicated region body
PF: predicated region fallthrough
CT: control target
= control target key end

     0   :  { %9 = vsyncpa [#allocation4], 0  ;;  %s698_s0 = inlined_call_operand.hbm [shape: bf16[8,256], index: 0, kind: input, shape index: {}]   ;;  %s699_s1 = inlined_call_operand.hbm [shape: bf16[256,128], index: 1, kind: input, shape index: {}]   ;;  %s700_s2 = inlined_call_operand.hbm [shape: bf16[128,256], index: 2, kind: input, shape index: {}]   ;;  %s701_s3 = inlined_call_operand.vmem [shape: f32[1,256], index: 3, kind: input, shape index: {}]   ;;  %s702_s4 = inlined_call_operand.hbm [shape: bf16[8,256], index: 4, kind: output, shape index: {}]  }
   0x1   :  { %10 = vsyncpa [#allocation7], 0  ;;  %s27_s17 = sshll.u32 %s699_s1, 4  ;;  %s28_s17 = int_to_ptr.hbm [resolvable:$true] %s27_s17 }
   0x2   :  { %11 = vsyncpa [#allocation5], 0  ;;  %s650_s18 = smov [#allocation6]   ;;  %s17_s22 = sshll.u32 %s698_s0, 4  ;;  %s18_s22 = int_to_ptr.hbm [resolvable:$true] %s17_s22 }
   0x3   :  { %s29_s19 = sshll.u32 %s650_s18, 4  ;;  %s651_s23 = smov 64   ;;  %s30_s19 = int_to_ptr.vmem [resolvable:$true] %s29_s19 }
   0x4   :  { %s652_s24 = smov 4   ;;  %s653_s25 = smov [#allocation3]  }
   0x5   :  { %35 = dma.hbm_to_vmem [thread:$0]  %s28_s17, 2048, %s30_s19, [#allocation7], %s651_s23, %s651_s23, %s652_s24  }
   0x6   :  { %s19_s26 = sshll.u32 %s653_s25, 4  ;;  %s40_s29 = sshll.u32 %s700_s2, 4  ;;  %s20_s26 = int_to_ptr.vmem [resolvable:$true] %s19_s26  ;;  %s41_s29 = int_to_ptr.hbm [resolvable:$true] %s40_s29 }
   0x7   :  { %22 = dma.hbm_to_vmem [thread:$0]  %s18_s22, 128, %s20_s26, [#allocation4]  }
   0x8   :  { %s654_s1 = smov [#allocation8]   ;;  %s655_s5 = smov 128  }
   0x9   :  { %s42_s30 = sshll.u32 %s654_s1, 4  ;;  %s656_s6 = smov 8   ;;  %s43_s30 = int_to_ptr.vmem [resolvable:$true] %s42_s30 }
   0xa   :  { %48 = dma.hbm_to_vmem [thread:$0]  %s41_s29, 2048, %s43_s30, [#allocation7], %s655_s5, %s655_s5, %s656_s6  }
   0xb   :  { %644 = dma.done.wait [#allocation4], 128  }
   0xc   :  { %645 = vsyncadd [#allocation4], 4294967168 }
   0xd   :  { %646 = dma.done.wait [#allocation7], 4096  }
   0xe   :  { %647 = vsyncadd [#allocation7], 4294963200  ;;  %v515_v0 = vld [vmem:[#allocation6 + $0x38] sm:$0xff]  ;;  %v514_v2 = vld [vmem:[#allocation6 + $0x30] sm:$0xff]  ;;  %s657_s7 = smov [#allocation9]   ;;  %s369_s11 = sshll.u32 %s702_s4, 4  ;;  %s370_s11 = int_to_ptr.hbm [resolvable:$true] %s369_s11 }
   0xf   :  { %v523_v1 = vld [vmem:[#allocation6 + $0x78] sm:$0xff]  ;;  %203 = vmatpush.bf16.msra.mxu0 %v515_v0  ;;  %v522_v3 = vld [vmem:[#allocation6 + $0x70] sm:$0xff]  ;;  %v513_v4 = vld [vmem:[#allocation6 + $0x28] sm:$0xff]  ;;  %s367_s8 = sshll.u32 %s657_s7, 4  ;;  %s368_s8 = int_to_ptr.vmem [resolvable:$true] %s367_s8 }
  0x10   :  { %216 = vmatpush.bf16.msra.mxu1 %v523_v1  ;;  %v521_v5 = vld [vmem:[#allocation6 + $0x68] sm:$0xff]  ;;  %v502_v6 = vld [vmem:[#allocation8 + $0x70] sm:$0xf]  ;;  %v539_v7 = vld [vmem:[#allocation8 + $0x74] sm:$0xf0] }
  0x11   :  { %v538_v8 = vld [vmem:[#allocation8 + $0x74] sm:$0xf]  ;;  %v504_v9 = vld [vmem:[#allocation8 + $0x78] sm:$0xf0]  ;;  %v503_v10 = vor.u32 %v539_v7, %v502_v6  ;;  %v494_v12 = vld [vmem:[#allocation8 + $0x60] sm:$0xf] }
  0x12   :  { %v507_v11 = vor.u32 %v538_v8, %v504_v9  ;;  %v537_v13 = vld [vmem:[#allocation8 + $0x64] sm:$0xf0]  ;;  %v536_v14 = vld [vmem:[#allocation8 + $0x64] sm:$0xf]  ;;  %v496_v15 = vld [vmem:[#allocation8 + $0x68] sm:$0xf0] }
  0x13   :  { %204 = vmatpush.bf16.msra.mxu0 %v514_v2  ;;  %v512_v16 = vld [vmem:[#allocation6 + $0x20] sm:$0xff]  ;;  %334 = vmatpush.bf16.msra.mxu2 %v503_v10  ;;  %v495_v18 = vor.u32 %v537_v13, %v494_v12  ;;  %v499_v19 = vor.u32 %v536_v14, %v496_v15  ;;  %v486_v20 = vld [vmem:[#allocation8 + $0x50] sm:$0xf]  ;;  %v535_v21 = vld [vmem:[#allocation8 + $0x54] sm:$0xf0] }
  0x14   :  { %217 = vmatpush.bf16.msra.mxu1 %v522_v3  ;;  %v520_v17 = vld [vmem:[#allocation6 + $0x60] sm:$0xff]  ;;  %347 = vmatpush.bf16.msra.mxu3 %v507_v11  ;;  %v534_v22 = vld [vmem:[#allocation8 + $0x54] sm:$0xf]  ;;  %v488_v23 = vld [vmem:[#allocation8 + $0x58] sm:$0xf0]  ;;  %v487_v26 = vor.u32 %v535_v21, %v486_v20 }
  0x15   :  { %v511_v24 = vld [vmem:[#allocation6 + $0x18] sm:$0xff]  ;;  %v491_v27 = vor.u32 %v534_v22, %v488_v23  ;;  %v478_v28 = vld [vmem:[#allocation8 + $0x40] sm:$0xf]  ;;  %v533_v29 = vld [vmem:[#allocation8 + $0x44] sm:$0xf0] }
  0x16   :  { %v519_v25 = vld [vmem:[#allocation6 + $0x58] sm:$0xff]  ;;  %v532_v30 = vld [vmem:[#allocation8 + $0x44] sm:$0xf]  ;;  %v480_v31 = vld [vmem:[#allocation8 + $0x48] sm:$0xf0]  ;;  %v479_v34 = vor.u32 %v533_v29, %v478_v28 }
  0x17   :  { %205 = vmatpush.bf16.msra.mxu0 %v513_v4  ;;  %335 = vmatpush.bf16.msra.mxu2 %v495_v18  ;;  %v510_v32 = vld [vmem:[#allocation6 + $0x10] sm:$0xff]  ;;  %v483_v35 = vor.u32 %v532_v30, %v480_v31  ;;  %v531_v37 = vld [vmem:[#allocation8 + $0x34] sm:$0xf0]  ;;  %v472_v39 = vld [vmem:[#allocation8 + $0x38] sm:$0xf0] }
  0x18   :  { %218 = vmatpush.bf16.msra.mxu1 %v521_v5  ;;  %348 = vmatpush.bf16.msra.mxu3 %v499_v19  ;;  %v518_v33 = vld [vmem:[#allocation6 + $0x50] sm:$0xff]  ;;  %v509_v42 = vld [vmem:[#allocation6 + $0x8] sm:$0xff]  ;;  %v67_v44 = vld [vmem:[#allocation3] sm:$0xff] }
  0x19   :  { %v470_v36 = vld [vmem:[#allocation8 + $0x30] sm:$0xf]  ;;  %v530_v38 = vld [vmem:[#allocation8 + $0x34] sm:$0xf]  ;;  %v517_v43 = vld [vmem:[#allocation6 + $0x48] sm:$0xff]  ;;  %v101_v45 = vunpack.c.l.b16 %v67_v44  ;;  %v102_v46 = vunpack.c.h.b16 %v67_v44 }
  0x1a   :  { %v471_v40 = vor.u32 %v531_v37, %v470_v36  ;;  %v475_v41 = vor.u32 %v530_v38, %v472_v39  ;;  %v508_v47 = vld [vmem:[#allocation6] sm:$0xff]  ;;  %v529_v52 = vld [vmem:[#allocation8 + $0x24] sm:$0xf0]  ;;  %v464_v55 = vld [vmem:[#allocation8 + $0x28] sm:$0xf0] }
  0x1b   :  { %206 = vmatpush.bf16.msra.mxu0 %v512_v16  ;;  %336 = vmatpush.bf16.msra.mxu2 %v487_v26  ;;  %v516_v48 = vld [vmem:[#allocation6 + $0x40] sm:$0xff]  ;;  %v103_v49 = vpack.c.b16 %v101_v45, %v101_v45  ;;  %v104_v50 = vpack.c.b16 %v102_v46, %v102_v46  ;;  %v454_v57 = vld [vmem:[#allocation8 + $0x10] sm:$0xf]  ;;  %v527_v58 = vld [vmem:[#allocation8 + $0x14] sm:$0xf0] }
  0x1c   :  { %219 = vmatpush.bf16.msra.mxu1 %v520_v17  ;;  %349 = vmatpush.bf16.msra.mxu3 %v491_v27  ;;  %v462_v51 = vld [vmem:[#allocation8 + $0x20] sm:$0xf]  ;;  %v528_v53 = vld [vmem:[#allocation8 + $0x24] sm:$0xf]  ;;  %v526_v59 = vld [vmem:[#allocation8 + $0x14] sm:$0xf]  ;;  %v455_v60 = vor.u32 %v527_v58, %v454_v57 }
  0x1d   :  { %v463_v54 = vor.u32 %v529_v52, %v462_v51  ;;  %v467_v56 = vor.u32 %v528_v53, %v464_v55  ;;  %v456_v61 = vld [vmem:[#allocation8 + $0x18] sm:$0xf0]  ;;  %v446_v63 = vld [vmem:[#allocation8] sm:$0xf]  ;;  %v525_v0 = vld [vmem:[#allocation8 + $0x4] sm:$0xf0] }
  0x1e   :  { %v459_v62 = vor.u32 %v526_v59, %v456_v61  ;;  %v524_v1 = vld [vmem:[#allocation8 + $0x4] sm:$0xf]  ;;  %v447_v2 = vor.u32 %v525_v0, %v446_v63  ;;  %v448_v3 = vld [vmem:[#allocation8 + $0x8] sm:$0xf0]  ;;  %v248_v12 = vld [vmem:[%s701_s3] sm:$0x3] }
  0x1f   :  { %207 = vmatpush.bf16.msra.mxu0 %v511_v24  ;;  %337 = vmatpush.bf16.msra.mxu2 %v479_v34  ;;  %v451_v4 = vor.u32 %v524_v1, %v448_v3  ;;  %v250_v13 = vperm.slane %v248_v12, 0  ;;  %v251_v14 = vperm.slane %v248_v12, 1 }
  0x20   :  { %220 = vmatpush.bf16.msra.mxu1 %v519_v25  ;;  %350 = vmatpush.bf16.msra.mxu3 %v483_v35 }
  0x23   :  { %208 = vmatpush.bf16.msra.mxu0 %v510_v32  ;;  %338 = vmatpush.bf16.msra.mxu2 %v471_v40 }
  0x24   :  { %221 = vmatpush.bf16.msra.mxu1 %v518_v33  ;;  %351 = vmatpush.bf16.msra.mxu3 %v475_v41 }
  0x27   :  { %209 = vmatpush.bf16.msra.mxu0 %v509_v42  ;;  %339 = vmatpush.bf16.msra.mxu2 %v463_v54 }
  0x28   :  { %222 = vmatpush.bf16.msra.mxu1 %v517_v43  ;;  %352 = vmatpush.bf16.msra.mxu3 %v467_v56 }
  0x2b   :  { %210 = vmatpush.bf16.msra.mxu0 %v508_v47  ;;  %340 = vmatpush.bf16.msra.mxu2 %v455_v60 }
  0x2c   :  { %223 = vmatpush.bf16.msra.mxu1 %v516_v48  ;;  %353 = vmatpush.bf16.msra.mxu3 %v459_v62 }
  0x2e   :  { %211 = vmatmul.bf16.vlgmr.msra.gmra.mxu0 %v103_v49 }
  0x2f   :  { %224 = vmatmul.bf16.vlgmr.msra.gmra.mxu1 %v104_v50  ;;  %341 = vmatpush.bf16.msra.mxu2 %v447_v2 }
  0x30   :  { %354 = vmatpush.bf16.msra.mxu3 %v451_v4 }
  0xab   :  { %v212_v5 = vpop.f32.mrf.mxu0 }
  0xac   :  { %v225_v6 = vpop.f32.mrf.mxu1 }
  0xad   :  { %v226_v7 = vadd.f32 %v225_v6, %v212_v5 }
  0xaf   :  { %v229_v8 = vpack.c.bf16 %v226_v7, %v226_v7 }
  0xb1   :  { %230 = vst [vmem:[#allocation2] sm:$0xf] %v229_v8 }
  0xb3   :  { %v214_v9 = vpop.f32.mrf.mxu0 }
  0xb4   :  { %v227_v10 = vpop.f32.mrf.mxu1 }
  0xb8   :  { %v231_v11 = vld [vmem:[#allocation2] sm:$0xf] }
  0xb9   :  { %342 = vmatmul.bf16.vlgmr.msra.gmra.mxu2 %v231_v11  ;;  %355 = vmatmul.bf16.vlgmr.msra.gmra.mxu3 %v231_v11 }
 0x13c   :  { %v343_v15 = vpop.f32.mrf.mxu2  ;;  %v356_v16 = vpop.f32.mrf.mxu3 }
 0x13d   :  { %v344_v17 = vadd.f32 %v343_v15, %v250_v13  ;;  %v357_v18 = vadd.f32 %v356_v16, %v251_v14 }
 0x13f   :  { %v360_v19 = vpack.c.bf16 %v357_v18, %v344_v17 }
 0x141   :  { %361 = vst [vmem:[#allocation9] sm:$0xff] %v360_v19 }
 0x142   :  { %372 = dma.vmem_to_hbm [thread:$0]  %s368_s8, 128, %s370_s11, [#allocation5]  }
 0x144   :  { %v345_v20 = vpop.f32.mrf.mxu2  ;;  %v358_v21 = vpop.f32.mrf.mxu3 }
 0x145   :  { %648 = dma.done.wait [#allocation5], 128  }
 0x146   :  { %649 = vsyncadd [#allocation5], 4294967168 }
 0x147   :  { %377 = vsyncpa [#allocation4], 1 }
 0x148   :  { %378 = vsyncpa [#allocation7], 1 }
 0x149   :  { %379 = vsyncpa [#allocation5], 1 }

</bundles_post_ra>
